<compile_context>
chip_gen: v6e
topology: v6e:2x2x1
jax: 0.10.0
libtpu: 0.0.40
codegen_flags: <defaults>
</compile_context>

<pallas_src>
import jax
import jax.numpy as jnp
from jax.experimental import pallas as pl
from jax.experimental.pallas import tpu as pltpu

_LANE = 128  # lane width / lane-dense output padding for the 4-class head


def dcd_kernel(x_ref, w1_ref, b1_ref, w2_ref, b2_ref, w3_ref, b3_ref, o_ref):
    cdt = w1_ref.dtype                       # MXU feed dtype (f32 or bf16)
    x = x_ref[...].astype(cdt)

    # fc1 + ReLU  (f32 MXU accumulation, f32 elementwise)
    h1 = jnp.dot(x, w1_ref[...], preferred_element_type=jnp.float32)
    h1 = jnp.maximum(h1 + b1_ref[...], 0.0)

    # fc2 + ReLU
    h2 = jnp.dot(h1.astype(cdt), w2_ref[...], preferred_element_type=jnp.float32)
    h2 = jnp.maximum(h2 + b2_ref[...], 0.0)

    # fc3 (lane-padded to 128 columns) + numerically stable softmax
    logits = jnp.dot(h2.astype(cdt), w3_ref[...], preferred_element_type=jnp.float32)
    logits = logits + b3_ref[...]            # padded columns carry bias -1e30
    m = jnp.max(logits, axis=-1, keepdims=True)
    e = jnp.exp(logits - m)
    denom = jnp.sum(e, axis=-1, keepdims=True)
    inv = pl.reciprocal(denom, approx=True)  # EUP slot instead of a VPU divide
    o_ref[...] = (e * inv).astype(o_ref.dtype)


def _pick_tb(B):
    """Batch tile: one grid step for small B; otherwise the largest multiple of
    8 (<=512) dividing B so large batches keep a >1 'parallel' grid for v7x."""
    if B <= 512:
        return B
    for t in range(512, 0, -8):
        if B % t == 0:
            return t
    return B  # odd batch: single tile (block == full dim is always legal)


def _resident_spec(shape):
    """BlockSpec for a grid-invariant operand (same block every step):
    single-buffered so the weights are not pointlessly double-buffered."""
    index_map = lambda i: (0,) * len(shape)
    try:
        return pl.BlockSpec(shape, index_map, pipeline_mode=pl.Buffered(1))
    except TypeError:  # older Pallas without pipeline_mode on BlockSpec
        return pl.BlockSpec(shape, index_map)


def dcd_forward(x, w1, b1, w2, b2, w3, b3, *, compute_dtype=jnp.float32, tb=None):
    """softmax(relu(relu(x@w1+b1)@w2+b2)@w3+b3, axis=1).

    Weights are (in, out) — transposed vs. torch.nn.Linear.  `compute_dtype`
    selects the MXU feed dtype (jnp.bfloat16 recommended on v6e/v7x);
    accumulation and all elementwise math stay f32.
    """
    B, F_in = x.shape
    H1 = w1.shape[1]
    H2 = w2.shape[1]
    C = w3.shape[1]

    # Lane-dense fc3: pad to 128 output columns; padded bias = -1e30 so padded
    # classes get softmax probability exactly 0.
    C_pad = max(_LANE, C)
    if C_pad != C:
        w3 = jnp.zeros((H2, C_pad), w3.dtype).at[:, :C].set(w3)
        b3 = jnp.full((1, C_pad), -1e30, b3.dtype).at[:, :C].set(b3)

    # MXU feed dtype for weights (biases stay f32 for the elementwise path).
    w1c = w1.astype(compute_dtype)
    w2c = w2.astype(compute_dtype)
    w3c = w3.astype(compute_dtype)

    if tb is None:
        tb = _pick_tb(B)
    assert B % tb == 0
    grid = (pl.cdiv(B, tb),)

    nbytes = lambda a: a.size * a.dtype.itemsize
    cost = pl.CostEstimate(
        flops=2 * B * (F_in * H1 + H1 * H2 + H2 * C_pad),
        transcendentals=B * (C_pad + 1),                     # exp + reciprocal
        bytes_accessed=(nbytes(x) + nbytes(w1c) + nbytes(w2c) + nbytes(w3c)
                        + 4 * (H1 + H2 + C_pad)              # f32 biases
                        + 4 * B * C_pad),                    # f32 output
    )

    out = pl.pallas_call(
        dcd_kernel,
        out_shape=jax.ShapeDtypeStruct((B, C_pad), jnp.float32),
        grid=grid,
        in_specs=[
            pl.BlockSpec((tb, F_in), lambda i: (i, 0)),      # x: tiled over batch
            _resident_spec((F_in, H1)),                      # w1 (whole, 1-buffered)
            _resident_spec((1, H1)),                         # b1
            _resident_spec((H1, H2)),                        # w2
            _resident_spec((1, H2)),                         # b2
            _resident_spec((H2, C_pad)),                     # w3 (padded)
            _resident_spec((1, C_pad)),                      # b3 (padded)
        ],
        out_specs=pl.BlockSpec((tb, C_pad), lambda i: (i, 0)),
        compiler_params=pltpu.CompilerParams(
            dimension_semantics=("parallel",),               # megacore batch split
        ),
        cost_estimate=cost,
    )(x, w1c, b1, w2c, b2, w3c, b3)

    return out[:, :C]


def init_linear(key, fan_in, fan_out):
    # Mimic torch.nn.Linear default init: U(-1/sqrt(fan_in), 1/sqrt(fan_in)).
    kw, kb = jax.random.split(key)
    bound = 1.0 / (fan_in ** 0.5)
    w = jax.random.uniform(kw, (fan_in, fan_out), jnp.float32, -bound, bound)
    b = jax.random.uniform(kb, (1, fan_out), jnp.float32, -bound, bound)
    return w, b


def dcd_reference(x, w1, b1, w2, b2, w3, b3):
    h1 = jnp.maximum(x @ w1 + b1, 0.0)
    h2 = jnp.maximum(h1 @ w2 + b2, 0.0)
    return jax.nn.softmax(h2 @ w3 + b3, axis=1)


if __name__ == "__main__":
    # Small shapes consistent with the module (input -> h1 -> h2 -> 4 classes).
    B, F_in, H1, H2, C = 16, 256, 128, 128, 4

    key = jax.random.PRNGKey(0)
    kx, k1, k2, k3 = jax.random.split(key, 4)
    x = jax.random.normal(kx, (B, F_in), jnp.float32)
    w1, b1 = init_linear(k1, F_in, H1)
    w2, b2 = init_linear(k2, H1, H2)
    w3, b3 = init_linear(k3, H2, C)

    ref = dcd_reference(x, w1, b1, w2, b2, w3, b3)

    # f32 MXU feed (safe on all generations, incl. v5e).
    out = jax.block_until_ready(dcd_forward(x, w1, b1, w2, b2, w3, b3))
    assert out.shape == (B, C)
    assert jnp.allclose(out, ref, atol=5e-3), "f32 path mismatch vs reference"
    assert jnp.allclose(jnp.sum(out, axis=1), 1.0, atol=5e-3)

    # bf16 MXU feed (native fast path on v6e/v7x); f32 accumulation inside.
    out_bf16 = jax.block_until_ready(
        dcd_forward(x, w1, b1, w2, b2, w3, b3, compute_dtype=jnp.bfloat16))
    assert out_bf16.shape == (B, C)
    assert jnp.allclose(out_bf16, ref, atol=2e-2), "bf16 path mismatch vs reference"

    print("KERNEL_OK")
</pallas_src>

<mosaic_0001>
module attributes {stable_mosaic.version = 11 : i64} {
  func.func @dcd_kernel(%arg0: i32, %arg1: memref<16x256xf32, #tpu.memory_space<vmem>>, %arg2: memref<256x128xf32, #tpu.memory_space<vmem>>, %arg3: memref<1x128xf32, #tpu.memory_space<vmem>>, %arg4: memref<128x128xf32, #tpu.memory_space<vmem>>, %arg5: memref<1x128xf32, #tpu.memory_space<vmem>>, %arg6: memref<128x128xf32, #tpu.memory_space<vmem>>, %arg7: memref<1x128xf32, #tpu.memory_space<vmem>>, %arg8: memref<16x128xf32, #tpu.memory_space<vmem>>) attributes {dimension_semantics = [#tpu.dimension_semantics<parallel>], iteration_bounds = array<i64: 1>, scalar_prefetch = 0 : i64, scratch_operands = 0 : i64, tpu.core_type = #tpu.core_type<tc>, window_params = [{transform_indices = @transform_0, window_bounds = array<i64: 16, 256>}, {pipeline_mode = #tpu.pipeline_mode<synchronous>, transform_indices = @transform_1, window_bounds = array<i64: 256, 128>}, {pipeline_mode = #tpu.pipeline_mode<synchronous>, transform_indices = @transform_2, window_bounds = array<i64: 1, 128>}, {pipeline_mode = #tpu.pipeline_mode<synchronous>, transform_indices = @transform_3, window_bounds = array<i64: 128, 128>}, {pipeline_mode = #tpu.pipeline_mode<synchronous>, transform_indices = @transform_4, window_bounds = array<i64: 1, 128>}, {pipeline_mode = #tpu.pipeline_mode<synchronous>, transform_indices = @transform_5, window_bounds = array<i64: 128, 128>}, {pipeline_mode = #tpu.pipeline_mode<synchronous>, transform_indices = @transform_6, window_bounds = array<i64: 1, 128>}, {transform_indices = @transform_7, window_bounds = array<i64: 16, 128>}]} {
    %c0 = arith.constant 0 : index
    %c0_0 = arith.constant 0 : index
    %0 = vector.load %arg1[%c0, %c0_0] : memref<16x256xf32, #tpu.memory_space<vmem>>, vector<16x256xf32>
    %c0_1 = arith.constant 0 : index
    %c0_2 = arith.constant 0 : index
    %1 = vector.load %arg2[%c0_1, %c0_2] : memref<256x128xf32, #tpu.memory_space<vmem>>, vector<256x128xf32>
    %cst = arith.constant dense<0.000000e+00> : vector<16x128xf32>
    %2 = tpu.matmul %0, %1, %cst {dimension_numbers = #tpu.dot_dimension_numbers<[1], [0], [0], [1], [0, 0, 1, 1], [], []>} : vector<16x256xf32>, vector<256x128xf32>, vector<16x128xf32> -> vector<16x128xf32>
    %c0_3 = arith.constant 0 : index
    %c0_4 = arith.constant 0 : index
    %3 = vector.load %arg3[%c0_3, %c0_4] : memref<1x128xf32, #tpu.memory_space<vmem>>, vector<1x128xf32>
    %4 = vector.broadcast %3 : vector<1x128xf32> to vector<16x128xf32>
    %5 = arith.addf %2, %4 : vector<16x128xf32>
    %cst_5 = arith.constant 0.000000e+00 : f32
    %6 = vector.broadcast %cst_5 : f32 to vector<16x128xf32>
    %7 = arith.maximumf %5, %6 : vector<16x128xf32>
    %c0_6 = arith.constant 0 : index
    %c0_7 = arith.constant 0 : index
    %8 = vector.load %arg4[%c0_6, %c0_7] : memref<128x128xf32, #tpu.memory_space<vmem>>, vector<128x128xf32>
    %cst_8 = arith.constant dense<0.000000e+00> : vector<16x128xf32>
    %9 = tpu.matmul %7, %8, %cst_8 {dimension_numbers = #tpu.dot_dimension_numbers<[1], [0], [0], [1], [0, 0, 1, 1], [], []>} : vector<16x128xf32>, vector<128x128xf32>, vector<16x128xf32> -> vector<16x128xf32>
    %c0_9 = arith.constant 0 : index
    %c0_10 = arith.constant 0 : index
    %10 = vector.load %arg5[%c0_9, %c0_10] : memref<1x128xf32, #tpu.memory_space<vmem>>, vector<1x128xf32>
    %11 = vector.broadcast %10 : vector<1x128xf32> to vector<16x128xf32>
    %12 = arith.addf %9, %11 : vector<16x128xf32>
    %cst_11 = arith.constant 0.000000e+00 : f32
    %13 = vector.broadcast %cst_11 : f32 to vector<16x128xf32>
    %14 = arith.maximumf %12, %13 : vector<16x128xf32>
    %c0_12 = arith.constant 0 : index
    %c0_13 = arith.constant 0 : index
    %15 = vector.load %arg6[%c0_12, %c0_13] : memref<128x128xf32, #tpu.memory_space<vmem>>, vector<128x128xf32>
    %cst_14 = arith.constant dense<0.000000e+00> : vector<16x128xf32>
    %16 = tpu.matmul %14, %15, %cst_14 {dimension_numbers = #tpu.dot_dimension_numbers<[1], [0], [0], [1], [0, 0, 1, 1], [], []>} : vector<16x128xf32>, vector<128x128xf32>, vector<16x128xf32> -> vector<16x128xf32>
    %c0_15 = arith.constant 0 : index
    %c0_16 = arith.constant 0 : index
    %17 = vector.load %arg7[%c0_15, %c0_16] : memref<1x128xf32, #tpu.memory_space<vmem>>, vector<1x128xf32>
    %18 = vector.broadcast %17 : vector<1x128xf32> to vector<16x128xf32>
    %19 = arith.addf %16, %18 : vector<16x128xf32>
    %cst_17 = arith.constant dense<0xFF800000> : vector<16xf32>
    %20 = vector.multi_reduction <maximumf>, %19, %cst_17 [1] : vector<16x128xf32> to vector<16xf32>
    %21 = vector.shape_cast %20 : vector<16xf32> to vector<16x1xf32>
    %22 = vector.broadcast %21 : vector<16x1xf32> to vector<16x128xf32>
    %23 = arith.subf %19, %22 : vector<16x128xf32>
    %24 = math.exp %23 : vector<16x128xf32>
    %cst_18 = arith.constant dense<0.000000e+00> : vector<16xf32>
    %25 = vector.multi_reduction <add>, %24, %cst_18 [1] : vector<16x128xf32> to vector<16xf32>
    %26 = vector.shape_cast %25 : vector<16xf32> to vector<16x1xf32>
    %27 = tpu.reciprocal %26 {approx = true} : vector<16x1xf32> -> vector<16x1xf32>
    %28 = vector.broadcast %27 : vector<16x1xf32> to vector<16x128xf32>
    %29 = arith.mulf %24, %28 : vector<16x128xf32>
    %c0_19 = arith.constant 0 : index
    %c0_20 = arith.constant 0 : index
    %30 = vector.load %arg8[%c0_19, %c0_20] : memref<16x128xf32, #tpu.memory_space<vmem>>, vector<16x128xf32>
    tpu.vector_store %arg8[%c0_19, %c0_20], %29 {strides = array<i32>} : memref<16x128xf32, #tpu.memory_space<vmem>>, vector<16x128xf32>,
    return
  }
  func.func @transform_0(%arg0: i32) -> (i32, i32) {
    %c0_i32 = arith.constant 0 : i32
    %c0_i32_0 = arith.constant 0 : i32
    return %arg0, %c0_i32 : i32, i32
  }
  func.func @transform_1(%arg0: i32) -> (i32, i32) {
    %c0_i32 = arith.constant 0 : i32
    %c0_i32_0 = arith.constant 0 : i32
    %c0_i32_1 = arith.constant 0 : i32
    return %c0_i32, %c0_i32_0 : i32, i32
  }
  func.func @transform_2(%arg0: i32) -> (i32, i32) {
    %c0_i32 = arith.constant 0 : i32
    %c0_i32_0 = arith.constant 0 : i32
    %c0_i32_1 = arith.constant 0 : i32
    return %c0_i32, %c0_i32_0 : i32, i32
  }
  func.func @transform_3(%arg0: i32) -> (i32, i32) {
    %c0_i32 = arith.constant 0 : i32
    %c0_i32_0 = arith.constant 0 : i32
    %c0_i32_1 = arith.constant 0 : i32
    return %c0_i32, %c0_i32_0 : i32, i32
  }
  func.func @transform_4(%arg0: i32) -> (i32, i32) {
    %c0_i32 = arith.constant 0 : i32
    %c0_i32_0 = arith.constant 0 : i32
    %c0_i32_1 = arith.constant 0 : i32
    return %c0_i32, %c0_i32_0 : i32, i32
  }
  func.func @transform_5(%arg0: i32) -> (i32, i32) {
    %c0_i32 = arith.constant 0 : i32
    %c0_i32_0 = arith.constant 0 : i32
    %c0_i32_1 = arith.constant 0 : i32
    return %c0_i32, %c0_i32_0 : i32, i32
  }
  func.func @transform_6(%arg0: i32) -> (i32, i32) {
    %c0_i32 = arith.constant 0 : i32
    %c0_i32_0 = arith.constant 0 : i32
    %c0_i32_1 = arith.constant 0 : i32
    return %c0_i32, %c0_i32_0 : i32, i32
  }
  func.func @transform_7(%arg0: i32) -> (i32, i32) {
    %c0_i32 = arith.constant 0 : i32
    %c0_i32_0 = arith.constant 0 : i32
    return %arg0, %c0_i32 : i32, i32
  }
}

</mosaic_0001>

<bundles_post_ra>
// kernel: tpu_custom_call.1
= control target key start
LH: loop header
LB: loop body
LE: loop exit
PB: predicated region body
PF: predicated region fallthrough
CT: control target
= control target key end

     0   :  { %12 = vsyncpa [#allocation3], 0  ;;  %s796_s0 = inlined_call_operand.hbm [shape: f32[16,256], index: 0, kind: input, shape index: {}]   ;;  %s797_s1 = inlined_call_operand.hbm [shape: f32[256,128], index: 1, kind: input, shape index: {}]   ;;  %s798_s2 = inlined_call_operand.vmem [shape: f32[1,128], index: 2, kind: input, shape index: {}]   ;;  %s799_s3 = inlined_call_operand.hbm [shape: f32[128,128], index: 3, kind: input, shape index: {}]   ;;  %s800_s4 = inlined_call_operand.vmem [shape: f32[1,128], index: 4, kind: input, shape index: {}]   ;;  %s801_s5 = inlined_call_operand.hbm [shape: f32[128,128], index: 5, kind: input, shape index: {}]   ;;  %s802_s6 = inlined_call_operand.vmem [shape: f32[1,128], index: 6, kind: input, shape index: {}]   ;;  %s803_s7 = inlined_call_operand.hbm [shape: f32[16,128], index: 7, kind: output, shape index: {}]  }
   0x1   :  { %13 = vsyncpa [#allocation6], 0 }
   0x2   :  { %14 = vsyncpa [#allocation9], 0 }
   0x3   :  { %15 = vsyncpa [#allocation4], 0  ;;  %s711_s24 = smov [#allocation5]  }
   0x4   :  { %s33_s25 = sshll.u32 %s711_s24, 4  ;;  %s34_s25 = int_to_ptr.vmem [resolvable:$true] %s33_s25 }
   0x5   :  { %s611_s26 = scalar_lea.vmem %s34_s25, 4096  ;;  %p616_p1 = scmp.lt.s32.totalorder %s34_s25, %s34_s25 }
   0x6   :  { %p612_p0 = scmp.ne.s32.totalorder %s34_s25, %s611_s26  ;;  %p617_p2 = scmp.lt.s32.totalorder %s611_s26, %s611_s26 }
   0x8   :  { %p618_p3 = por %p617_p2, %p616_p1 }
   0xa   :  { %p619_p4 = pnand %p618_p3, %p612_p0 }
   0xc   :  { %622 = shalt.err (!%p619_p4)
}
   0xd   :  { %s712_s27 = smov 128   ;;  %s713_s28 = smov 8  }
   0xe   :  { %39 = dma.hbm_to_vmem [thread:$0]  %s797_s1, 4096, %s34_s25, [#allocation6], %s712_s27, %s712_s27, %s713_s28  }
   0xf   :  { %s714_s8 = smov [#allocation2]  }
  0x10   :  { %s21_s9 = sshll.u32 %s714_s8, 4  ;;  %s22_s9 = int_to_ptr.vmem [resolvable:$true] %s21_s9 }
  0x11   :  { %s631_s10 = scalar_lea.vmem %s22_s9, 512  ;;  %p636_p6 = scmp.lt.s32.totalorder %s22_s9, %s22_s9 }
  0x12   :  { %p632_p5 = scmp.ne.s32.totalorder %s22_s9, %s631_s10  ;;  %p637_p7 = scmp.lt.s32.totalorder %s631_s10, %s631_s10 }
  0x14   :  { %p638_p8 = por %p637_p7, %p636_p6 }
  0x16   :  { %p639_p9 = pnand %p638_p8, %p632_p5 }
  0x18   :  { %642 = shalt.err (!%p639_p9)
}
  0x19   :  { %s715_s11 = smov 256   ;;  %s716_s12 = smov 16  }
  0x1a   :  { %27 = dma.hbm_to_vmem [thread:$0]  %s796_s0, 512, %s22_s9, [#allocation3], %s715_s11, %s715_s11, %s716_s12  }
  0x1b   :  { %s717_s15 = smov [#allocation7]   ;;  %s718_s17 = smov [#allocation8]  }
  0x1c   :  { %s47_s16 = sshll.u32 %s717_s15, 4  ;;  %s61_s1 = sshll.u32 %s718_s17, 4  ;;  %s48_s16 = int_to_ptr.vmem [resolvable:$true] %s47_s16  ;;  %s62_s1 = int_to_ptr.vmem [resolvable:$true] %s61_s1 }
  0x1d   :  { %s651_s18 = scalar_lea.vmem %s48_s16, 2048  ;;  %p656_p11 = scmp.lt.s32.totalorder %s48_s16, %s48_s16 }
  0x1e   :  { %p652_p10 = scmp.ne.s32.totalorder %s48_s16, %s651_s18  ;;  %p657_p12 = scmp.lt.s32.totalorder %s651_s18, %s651_s18 }
  0x20   :  { %p658_p13 = por %p657_p12, %p656_p11 }
  0x22   :  { %p659_p0 = pnand %p658_p13, %p652_p10 }
  0x24   :  { %662 = shalt.err (!%p659_p0)
}
  0x25   :  { %53 = dma.hbm_to_vmem [thread:$0]  %s799_s3, 2048, %s48_s16, [#allocation6], %s712_s27, %s712_s27, %s713_s28  }
  0x26   :  { %s671_s0 = scalar_lea.vmem %s62_s1, 2048  ;;  %p676_p2 = scmp.lt.s32.totalorder %s62_s1, %s62_s1 }
  0x27   :  { %p672_p1 = scmp.ne.s32.totalorder %s62_s1, %s671_s0  ;;  %p677_p3 = scmp.lt.s32.totalorder %s671_s0, %s671_s0 }
  0x29   :  { %p678_p4 = por %p677_p3, %p676_p2 }
  0x2b   :  { %p679_p5 = pnand %p678_p4, %p672_p1 }
  0x2d   :  { %682 = shalt.err (!%p679_p5)
}
  0x2e   :  { %67 = dma.hbm_to_vmem [thread:$0]  %s801_s5, 2048, %s62_s1, [#allocation9], %s712_s27, %s712_s27, %s713_s28  }
  0x2f   :  { %703 = dma.done.wait [#allocation3], 512  }
  0x30   :  { %704 = vsyncadd [#allocation3], 4294966784 }
  0x31   :  { %705 = dma.done.wait [#allocation6], 6144  }
  0x32   :  { %706 = vsyncadd [#allocation6], 4294961152 }
  0x33   :  { %707 = dma.done.wait [#allocation9], 2048  }
  0x34   :  { %708 = vsyncadd [#allocation9], 4294965248  ;;  %v117_v0 = vld [vmem:[#allocation5 + $0xf8] sm:$0xff]  ;;  %v116_v2 = vld [vmem:[#allocation5 + $0xf0] sm:$0xff] }
  0x35   :  { %v101_v1 = vld [vmem:[#allocation5 + $0x78] sm:$0xff]  ;;  %442 = vmatprep.subr.mxu0 %v117_v0  ;;  %v100_v3 = vld [vmem:[#allocation5 + $0x70] sm:$0xff]  ;;  %v115_v4 = vld [vmem:[#allocation5 + $0xe8] sm:$0xff] }
  0x36   :  { %443 = vmatpush3.msra.mxu0 %v101_v1  ;;  %v99_v5 = vld [vmem:[#allocation5 + $0x68] sm:$0xff]  ;;  %v114_v6 = vld [vmem:[#allocation5 + $0xe0] sm:$0xff]  ;;  %v113_v8 = vld [vmem:[#allocation5 + $0xd8] sm:$0xff] }
  0x37   :  { %444 = vmatprep.subr.mxu0 %v116_v2  ;;  %v98_v7 = vld [vmem:[#allocation5 + $0x60] sm:$0xff]  ;;  %v97_v9 = vld [vmem:[#allocation5 + $0x58] sm:$0xff]  ;;  %v112_v10 = vld [vmem:[#allocation5 + $0xd0] sm:$0xff] }
  0x38   :  { %445 = vmatpush3.msra.mxu0 %v100_v3  ;;  %v96_v11 = vld [vmem:[#allocation5 + $0x50] sm:$0xff]  ;;  %v111_v12 = vld [vmem:[#allocation5 + $0xc8] sm:$0xff]  ;;  %v110_v15 = vld [vmem:[#allocation5 + $0xc0] sm:$0xff] }
  0x39   :  { %446 = vmatprep.subr.mxu0 %v115_v4  ;;  %v83_v13 = vld [vmem:[#allocation2 + $0x8] sm:$0xff]  ;;  %v217_v16 = vld [vmem:[#allocation7 + $0x78] sm:$0xff]  ;;  %v216_v17 = vld [vmem:[#allocation7 + $0x70] sm:$0xff] }
  0x3a   :  { %447 = vmatpush3.msra.mxu0 %v99_v5  ;;  %v95_v14 = vld [vmem:[#allocation5 + $0x48] sm:$0xff]  ;;  %189 = vmatprep.mubr.f32.mxu0 %v83_v13  ;;  %v94_v18 = vld [vmem:[#allocation5 + $0x40] sm:$0xff]  ;;  %v109_v19 = vld [vmem:[#allocation5 + $0xb8] sm:$0xff] }
  0x3b   :  { %448 = vmatprep.subr.mxu0 %v114_v6  ;;  %516 = vmatprep.subr.mxu1 %v217_v16  ;;  %v215_v20 = vld [vmem:[#allocation7 + $0x68] sm:$0xff]  ;;  %v93_v21 = vld [vmem:[#allocation5 + $0x38] sm:$0xff]  ;;  %v108_v22 = vld [vmem:[#allocation5 + $0xb0] sm:$0xff] }
  0x3c   :  { %449 = vmatpush3.msra.mxu0 %v98_v7  ;;  %517 = vmatpush3.msra.mxu1 %v217_v16  ;;  %v214_v23 = vld [vmem:[#allocation7 + $0x60] sm:$0xff]  ;;  %v92_v24 = vld [vmem:[#allocation5 + $0x30] sm:$0xff]  ;;  %v107_v25 = vld [vmem:[#allocation5 + $0xa8] sm:$0xff] }
  0x3d   :  { %450 = vmatprep.subr.mxu0 %v113_v8  ;;  %518 = vmatprep.subr.mxu1 %v216_v17  ;;  %v213_v26 = vld [vmem:[#allocation7 + $0x58] sm:$0xff]  ;;  %v91_v27 = vld [vmem:[#allocation5 + $0x28] sm:$0xff]  ;;  %v106_v28 = vld [vmem:[#allocation5 + $0xa0] sm:$0xff] }
  0x3e   :  { %451 = vmatpush3.msra.mxu0 %v97_v9  ;;  %519 = vmatpush3.msra.mxu1 %v216_v17  ;;  %v212_v29 = vld [vmem:[#allocation7 + $0x50] sm:$0xff]  ;;  %v90_v30 = vld [vmem:[#allocation5 + $0x20] sm:$0xff]  ;;  %v105_v31 = vld [vmem:[#allocation5 + $0x98] sm:$0xff] }
  0x3f   :  { %452 = vmatprep.subr.mxu0 %v112_v10  ;;  %520 = vmatprep.subr.mxu1 %v215_v20  ;;  %v211_v32 = vld [vmem:[#allocation7 + $0x48] sm:$0xff]  ;;  %v89_v33 = vld [vmem:[#allocation5 + $0x18] sm:$0xff]  ;;  %v104_v34 = vld [vmem:[#allocation5 + $0x90] sm:$0xff] }
  0x40   :  { %453 = vmatpush3.msra.mxu0 %v96_v11  ;;  %521 = vmatpush3.msra.mxu1 %v215_v20  ;;  %v210_v35 = vld [vmem:[#allocation7 + $0x40] sm:$0xff]  ;;  %v88_v36 = vld [vmem:[#allocation5 + $0x10] sm:$0xff]  ;;  %v103_v37 = vld [vmem:[#allocation5 + $0x88] sm:$0xff] }
  0x41   :  { %454 = vmatprep.subr.mxu0 %v111_v12  ;;  %522 = vmatprep.subr.mxu1 %v214_v23  ;;  %v209_v38 = vld [vmem:[#allocation7 + $0x38] sm:$0xff]  ;;  %v87_v39 = vld [vmem:[#allocation5 + $0x8] sm:$0xff]  ;;  %v102_v40 = vld [vmem:[#allocation5 + $0x80] sm:$0xff] }
  0x42   :  { %455 = vmatpush3.msra.mxu0 %v95_v14  ;;  %523 = vmatpush3.msra.mxu1 %v214_v23  ;;  %v208_v41 = vld [vmem:[#allocation7 + $0x30] sm:$0xff]  ;;  %v86_v42 = vld [vmem:[#allocation5] sm:$0xff]  ;;  %v85_v44 = vld [vmem:[#allocation2 + $0x18] sm:$0xff] }
  0x43   :  { %456 = vmatprep.subr.mxu0 %v110_v15  ;;  %524 = vmatprep.subr.mxu1 %v213_v26  ;;  %v82_v43 = vld [vmem:[#allocation2] sm:$0xff]  ;;  %v84_v45 = vld [vmem:[#allocation2 + $0x10] sm:$0xff]  ;;  %v207_v46 = vld [vmem:[#allocation7 + $0x28] sm:$0xff] }
  0x44   :  { %457 = vmatpush3.msra.mxu0 %v94_v18  ;;  %525 = vmatpush3.msra.mxu1 %v213_v26  ;;  %v206_v47 = vld [vmem:[#allocation7 + $0x20] sm:$0xff]  ;;  %v205_v48 = vld [vmem:[#allocation7 + $0x18] sm:$0xff]  ;;  %v204_v49 = vld [vmem:[#allocation7 + $0x10] sm:$0xff] }
  0x45   :  { %458 = vmatprep.subr.mxu0 %v109_v19  ;;  %526 = vmatprep.subr.mxu1 %v212_v29  ;;  %v203_v50 = vld [vmem:[#allocation7 + $0x8] sm:$0xff]  ;;  %v202_v51 = vld [vmem:[#allocation7] sm:$0xff]  ;;  %v317_v52 = vld [vmem:[#allocation8 + $0x78] sm:$0xff] }
  0x46   :  { %459 = vmatpush3.msra.mxu0 %v93_v21  ;;  %527 = vmatpush3.msra.mxu1 %v212_v29  ;;  %v316_v53 = vld [vmem:[#allocation8 + $0x70] sm:$0xff]  ;;  %v315_v54 = vld [vmem:[#allocation8 + $0x68] sm:$0xff]  ;;  %v314_v55 = vld [vmem:[#allocation8 + $0x60] sm:$0xff] }
  0x47   :  { %460 = vmatprep.subr.mxu0 %v108_v22  ;;  %528 = vmatprep.subr.mxu1 %v211_v32  ;;  %v313_v56 = vld [vmem:[#allocation8 + $0x58] sm:$0xff]  ;;  %v312_v57 = vld [vmem:[#allocation8 + $0x50] sm:$0xff]  ;;  %v311_v58 = vld [vmem:[#allocation8 + $0x48] sm:$0xff] }
  0x48   :  { %461 = vmatpush3.msra.mxu0 %v92_v24  ;;  %529 = vmatpush3.msra.mxu1 %v211_v32  ;;  %v310_v59 = vld [vmem:[#allocation8 + $0x40] sm:$0xff]  ;;  %v309_v60 = vld [vmem:[#allocation8 + $0x38] sm:$0xff]  ;;  %v308_v61 = vld [vmem:[#allocation8 + $0x30] sm:$0xff] }
  0x49   :  { %462 = vmatprep.subr.mxu0 %v107_v25  ;;  %530 = vmatprep.subr.mxu1 %v210_v35  ;;  %v307_v62 = vld [vmem:[#allocation8 + $0x28] sm:$0xff]  ;;  %v306_v63 = vld [vmem:[#allocation8 + $0x20] sm:$0xff]  ;;  %v305_v11 = vld [vmem:[#allocation8 + $0x18] sm:$0xff] }
  0x4a   :  { %463 = vmatpush3.msra.mxu0 %v91_v27  ;;  %531 = vmatpush3.msra.mxu1 %v210_v35  ;;  %v439_v2 = vld [vmem:[%s798_s2] ss:$0 sm:$0xff]  ;;  %v304_v12 = vld [vmem:[#allocation8 + $0x10] sm:$0xff]  ;;  %v303_v13 = vld [vmem:[#allocation8 + $0x8] sm:$0xff] }
  0x4b   :  { %464 = vmatprep.subr.mxu0 %v106_v28  ;;  %532 = vmatprep.subr.mxu1 %v209_v38  ;;  %v302_v14 = vld [vmem:[#allocation8] sm:$0xff] }
  0x4c   :  { %465 = vmatpush3.msra.mxu0 %v90_v30  ;;  %533 = vmatpush3.msra.mxu1 %v209_v38  ;;  %v440_v15 = vld [vmem:[%s800_s4] ss:$0 sm:$0xff]  ;;  %s719_s4 = smov [#allocation10]  }
  0x4d   :  { %466 = vmatprep.subr.mxu0 %v105_v31  ;;  %534 = vmatprep.subr.mxu1 %v208_v41  ;;  %v441_v23 = vld [vmem:[%s802_s6] ss:$0 sm:$0xff]  ;;  %s425_s6 = sshll.u32 %s719_s4, 4  ;;  %s426_s6 = int_to_ptr.vmem [resolvable:$true] %s425_s6 }
  0x4e   :  { %467 = vmatpush3.msra.mxu0 %v89_v33  ;;  %535 = vmatpush3.msra.mxu1 %v208_v41  ;;  %s683_s26 = scalar_lea.vmem %s426_s6, 256  ;;  %p688_p7 = scmp.lt.s32.totalorder %s426_s6, %s426_s6 }
  0x4f   :  { %468 = vmatprep.subr.mxu0 %v104_v34  ;;  %536 = vmatprep.subr.mxu1 %v207_v46  ;;  %p684_p6 = scmp.ne.s32.totalorder %s426_s6, %s683_s26  ;;  %p689_p8 = scmp.lt.s32.totalorder %s683_s26, %s683_s26 }
  0x50   :  { %469 = vmatpush3.msra.mxu0 %v88_v36  ;;  %537 = vmatpush3.msra.mxu1 %v207_v46 }
  0x51   :  { %470 = vmatprep.subr.mxu0 %v103_v37  ;;  %538 = vmatprep.subr.mxu1 %v206_v47  ;;  %p690_p9 = por %p689_p8, %p688_p7 }
  0x52   :  { %471 = vmatpush3.msra.mxu0 %v87_v39  ;;  %539 = vmatpush3.msra.mxu1 %v206_v47 }
  0x53   :  { %472 = vmatprep.subr.mxu0 %v102_v40  ;;  %540 = vmatprep.subr.mxu1 %v205_v48  ;;  %p691_p10 = pnand %p690_p9, %p684_p6 }
  0x54   :  { %473 = vmatpush3.msra.mxu0 %v86_v42  ;;  %541 = vmatpush3.msra.mxu1 %v205_v48 }
  0x55   :  { %190 = vmatmul.mubr.f32.vlgmr.msra.gmra.mxu0 %v82_v43  ;;  %542 = vmatprep.subr.mxu1 %v204_v49 }
  0x56   :  { %194 = vmatprep.mubr.f32.mxu0 %v85_v44  ;;  %543 = vmatpush3.msra.mxu1 %v204_v49 }
  0x57   :  { %544 = vmatprep.subr.mxu1 %v203_v50  ;;  %551 = vmatprep.subr.mxu0 %v317_v52 }
  0x58   :  { %545 = vmatpush3.msra.mxu1 %v203_v50  ;;  %552 = vmatpush3.msra.mxu0 %v317_v52 }
  0x59   :  { %195 = vmatmul.mubr.f32.gmra.mxu0 %v84_v45  ;;  %546 = vmatprep.subr.mxu1 %v202_v51 }
  0x5a   :  { %547 = vmatpush3.msra.mxu1 %v202_v51  ;;  %553 = vmatprep.subr.mxu0 %v316_v53 }
  0x5b   :  { %554 = vmatpush3.msra.mxu0 %v316_v53 }
  0x5c   :  { %555 = vmatprep.subr.mxu0 %v315_v54 }
  0x5d   :  { %556 = vmatpush3.msra.mxu0 %v315_v54 }
  0x5e   :  { %557 = vmatprep.subr.mxu0 %v314_v55 }
  0x5f   :  { %558 = vmatpush3.msra.mxu0 %v314_v55 }
  0x60   :  { %559 = vmatprep.subr.mxu0 %v313_v56 }
  0x61   :  { %560 = vmatpush3.msra.mxu0 %v313_v56 }
  0x62   :  { %561 = vmatprep.subr.mxu0 %v312_v57 }
  0x63   :  { %562 = vmatpush3.msra.mxu0 %v312_v57 }
  0x64   :  { %563 = vmatprep.subr.mxu0 %v311_v58 }
  0x65   :  { %564 = vmatpush3.msra.mxu0 %v311_v58 }
  0x66   :  { %565 = vmatprep.subr.mxu0 %v310_v59 }
  0x67   :  { %566 = vmatpush3.msra.mxu0 %v310_v59 }
  0x68   :  { %567 = vmatprep.subr.mxu0 %v309_v60 }
  0x69   :  { %568 = vmatpush3.msra.mxu0 %v309_v60 }
  0x6a   :  { %569 = vmatprep.subr.mxu0 %v308_v61 }
  0x6b   :  { %570 = vmatpush3.msra.mxu0 %v308_v61 }
  0x6c   :  { %571 = vmatprep.subr.mxu0 %v307_v62 }
  0x6d   :  { %572 = vmatpush3.msra.mxu0 %v307_v62 }
  0x6e   :  { %573 = vmatprep.subr.mxu0 %v306_v63 }
  0x6f   :  { %574 = vmatpush3.msra.mxu0 %v306_v63 }
  0x70   :  { %575 = vmatprep.subr.mxu0 %v305_v11 }
  0x71   :  { %576 = vmatpush3.msra.mxu0 %v305_v11 }
  0x72   :  { %577 = vmatprep.subr.mxu0 %v304_v12 }
  0x73   :  { %578 = vmatpush3.msra.mxu0 %v304_v12 }
  0x74   :  { %579 = vmatprep.subr.mxu0 %v303_v13 }
  0x75   :  { %580 = vmatpush3.msra.mxu0 %v303_v13 }
  0x76   :  { %581 = vmatprep.subr.mxu0 %v302_v14 }
  0x77   :  { %582 = vmatpush3.msra.mxu0 %v302_v14 }
 0x115   :  { %v474_v0 = vpop.f32.mrf.mxu0 }
 0x117   :  { %v475_v1 = vpop.f32.mrf.mxu0 }
 0x118   :  { %v476_v3 = vadd.f32 %v475_v1, %v474_v0 }
 0x119   :  { %v477_v4 = vpop.f32.mrf.mxu0 }
 0x11a   :  { %v192_v5 = vadd.f32 %v476_v3, %v439_v2 }
 0x11b   :  { %v478_v6 = vpop.f32.mrf.mxu0 }
 0x11c   :  { %v479_v7 = vadd.f32 %v478_v6, %v477_v4  ;;  %v200_v8 = vmax.f32 %v192_v5, 0.0 }
 0x11e   :  { %v197_v9 = vadd.f32 %v479_v7, %v439_v2  ;;  %548 = vmatprep.mubr.f32.mxu1 %v200_v8 }
 0x120   :  { %v201_v10 = vmax.f32 %v197_v9, 0.0 }
 0x122   :  { %549 = vmatmul.mubr.f32.vlgmr.msra.gmra.mxu1 %v201_v10 }
 0x1e2   :  { %v550_v16 = vpop.f32.mrf.mxu1 }
 0x1e3   :  { %v297_v17 = vadd.f32 %v550_v16, %v440_v15 }
 0x1e4   :  { %v291_v18 = vpop.f32.mrf.mxu1 }
 0x1e5   :  { %v292_v19 = vadd.f32 %v440_v15, %v291_v18  ;;  %v301_v21 = vmax.f32 %v297_v17, 0.0 }
 0x1e7   :  { %v300_v20 = vmax.f32 %v292_v19, 0.0 }
 0x1e9   :  { %583 = vmatprep.mubr.f32.mxu0 %v300_v20 }
 0x1ea   :  { %584 = vmatmul.mubr.f32.vlgmr.msra.gmra.mxu0 %v301_v21 }
 0x2aa   :  { %v585_v22 = vpop.f32.mrf.mxu0 }
 0x2ab   :  { %v397_v26 = vadd.f32 %v585_v22, %v441_v23 }
 0x2ac   :  { %v391_v24 = vpop.f32.mrf.mxu0 }
 0x2ad   :  { %v392_v25 = vadd.f32 %v441_v23, %v391_v24 }
 0x2af   :  { %400 = vmax.xlane.f32.xlu0 %v392_v25 }
 0x2b3   :  { %402 = vmax.xlane.f32.xlu0 %v397_v26 }
 0x338   :  { %v401_v27 = vpop.xlane.xlu0 %400 }
 0x339   :  { %v404_v28 = vsub.f32 %v392_v25, %v401_v27 }
 0x33b   :  { %v406_v29 = vmul.f32 1.442695, %v404_v28 }
 0x33c   :  { %v403_v30 = vpop.xlane.xlu0 %402 }
 0x33d   :  { %595 = vpow2.f32 %v406_v29  ;;  %v405_v31 = vsub.f32 %v397_v26, %v403_v30 }
 0x33f   :  { %v408_v32 = vmul.f32 1.442695, %v405_v31 }
 0x341   :  { %597 = vpow2.f32 %v408_v32 }
 0x34a   :  { %v596_v33 = vpop.eup %595 }
 0x34b   :  { %410 = vadd.xlane.f32.xlu1 %v596_v33 }
 0x34e   :  { %v598_v34 = vpop.eup %597 }
 0x34f   :  { %412 = vadd.xlane.f32.xlu1 %v598_v34 }
 0x3d4   :  { %v411_v35 = vpop.xlane.xlu1 %410 }
 0x3d5   :  { %599 = vrcp.f32 %v411_v35 }
 0x3d8   :  { %v413_v36 = vpop.xlane.xlu1 %412 }
 0x3d9   :  { %601 = vrcp.f32 %v413_v36 }
 0x3e2   :  { %v600_v37 = vpop.eup %599 }
 0x3e3   :  { %v416_v38 = vmul.f32 %v600_v37, %v596_v33 }
 0x3e5   :  { %418 = vst [vmem:[#allocation10] sm:$0xff] %v416_v38 }
 0x3e6   :  { %v602_v39 = vpop.eup %601 }
 0x3e7   :  { %v417_v40 = vmul.f32 %v602_v39, %v598_v34 }
 0x3e9   :  { %419 = vst [vmem:[#allocation10 + $0x8] sm:$0xff] %v417_v40 }
 0x3ea   :  { %694 = shalt.err (!%p691_p10)
}
 0x3eb   :  { %431 = dma.vmem_to_hbm [thread:$0]  %s426_s6, 256, %s803_s7, [#allocation4], %s712_s27, %s712_s27, %s713_s28  }
 0x3ec   :  { %709 = dma.done.wait [#allocation4], 256  }
 0x3ed   :  { %710 = vsyncadd [#allocation4], 4294967040 }
 0x3ee   :  { %435 = vsyncpa [#allocation3], 1 }
 0x3ef   :  { %436 = vsyncpa [#allocation6], 1 }
 0x3f0   :  { %437 = vsyncpa [#allocation9], 1 }
 0x3f1   :  { %438 = vsyncpa [#allocation4], 1 }

</bundles_post_ra>
